<compile_context>
chip_gen: v5e
topology: v5e:2x2
jax: 0.10.0
libtpu: 0.0.40
codegen_flags: <defaults>
</compile_context>

<pallas_src>
import functools

import jax
import jax.numpy as jnp
from jax.experimental import pallas as pl
from jax.experimental.pallas import tpu as pltpu

_TM_CAP = 4096


def _round_up(x, m):
    return (x + m - 1) // m * m


def _vmem_params():
    """(tile budget, scoped vmem limit) in bytes, sized per TPU generation."""
    cap = 64 * 1024 * 1024  # conservative default (v7x-sized)
    try:
        info = pltpu.get_tpu_info()
        cap = int(getattr(info, "vmem_capacity_bytes", None) or cap)
    except Exception:
        pass
    limit = min(cap * 3 // 4, 96 * 1024 * 1024)   # 96 MiB on v5e/v6e, 48 MiB on v7x
    budget = max(limit - 8 * 1024 * 1024, 16 * 1024 * 1024)
    return budget, limit


# ----------------------------------------------------------------------------
# Pallas kernel: per segment s,  out_s = x @ W_s + b_s  (+ optional fused skip)
# ----------------------------------------------------------------------------
def _linear_kernel(*refs, nseg, add_skip, compute_dtype):
    # refs = [x_ref] + w_refs(nseg) + b_refs(nseg) + o_refs(nseg)
    x_ref = refs[0]
    w_refs = refs[1:1 + nseg]
    b_refs = refs[1 + nseg:1 + 2 * nseg]
    o_refs = refs[1 + 2 * nseg:1 + 3 * nseg]

    x = x_ref[...]
    x_c = x.astype(compute_dtype)                      # in-kernel cast (free VPU slot)
    x_skip = x.astype(jnp.float32) if add_skip else None  # f32 residual operand

    for w_ref, b_ref, o_ref in zip(w_refs, b_refs, o_refs):
        acc = jnp.dot(x_c, w_ref[...], preferred_element_type=jnp.float32)
        acc = acc + b_ref[...]                         # (1, d) f32 bias broadcast
        if add_skip:
            acc = acc + x_skip
        o_ref[...] = acc.astype(o_ref.dtype)


def _choose_tm(m, k, out_dims, x_bytes, out_bytes, w_bytes, tm_mult, budget):
    """Largest row tile (multiple of tm_mult, <= _TM_CAP) within the VMEM budget."""
    n_tot = sum(out_dims)
    tm = min(_TM_CAP, _round_up(m, tm_mult))

    def vmem_bytes(t):
        # double-buffered x tile + double-buffered per-segment output tiles
        # + resident weights/bias (constant block index -> fetched once)
        # + f32 epilogue temporaries (accumulators + x casts)
        return (2 * t * k * x_bytes
                + 2 * t * n_tot * out_bytes
                + k * n_tot * w_bytes + n_tot * 4
                + t * n_tot * 4 + 2 * t * k * 4)

    while tm > tm_mult and vmem_bytes(tm) > budget:
        tm = max(tm_mult, _round_up(tm // 2, tm_mult))
    # Keep grid >= 2 when possible so both TensorCores on dual-core chips (v7x)
    # get row tiles; costs at most one extra ~0.35us step on single-TC chips.
    if tm >= m and m > tm_mult:
        tm = _round_up(pl.cdiv(m, 2), tm_mult)
    return tm


def fused_linear_2d(x2d, w_list, b_list, *, out_dtype, compute_dtype, add_skip):
    """x2d: (M, K) unpadded; w_list[s]: (K, d_s); b_list[s]: (1, d_s) f32.

    Returns a tuple of per-segment outputs, each (M, d_s), from ONE pallas_call.
    """
    m, k = x2d.shape
    nseg = len(w_list)
    out_dims = [int(w.shape[1]) for w in w_list]

    x_bytes = x2d.dtype.itemsize
    out_bytes = jnp.dtype(out_dtype).itemsize
    w_bytes = jnp.dtype(compute_dtype).itemsize
    tm_mult = max(8, 32 // min(x_bytes, out_bytes))   # sublane packing (8/16/32)

    budget, vmem_limit = _vmem_params()
    tm = _choose_tm(m, k, out_dims, x_bytes, out_bytes, w_bytes, tm_mult, budget)
    grid = pl.cdiv(m, tm)

    kernel = functools.partial(_linear_kernel, nseg=nseg, add_skip=add_skip,
                               compute_dtype=compute_dtype)

    in_specs = [pl.BlockSpec((tm, k), lambda i: (i, 0))]
    in_specs += [pl.BlockSpec((k, d), lambda i: (0, 0)) for d in out_dims]
    in_specs += [pl.BlockSpec((1, d), lambda i: (0, 0)) for d in out_dims]
    out_specs = tuple(pl.BlockSpec((tm, d), lambda i: (i, 0)) for d in out_dims)
    out_shape = tuple(jax.ShapeDtypeStruct((m, d), out_dtype) for d in out_dims)

    outs = pl.pallas_call(
        kernel,
        out_shape=out_shape,
        grid=(grid,),
        in_specs=in_specs,
        out_specs=out_specs,
        compiler_params=pltpu.CompilerParams(
            dimension_semantics=("parallel",),
            vmem_limit_bytes=vmem_limit,
        ),
    )(x2d, *w_list, *b_list)
    return outs


# ----------------------------------------------------------------------------
# SkipMLP equivalent (mlp_hidden_dims='' -> single nn.Linear per segment),
# with 1..N parallel Linear layers fused into one pallas_call.
# ----------------------------------------------------------------------------
class FusedLinear:
    def __init__(self, key, in_dim, out_dims, *,
                 param_dtype=jnp.float32, compute_dtype=jnp.float32):
        self.in_dim = int(in_dim)
        self.out_dims = tuple(int(d) for d in out_dims)
        self.compute_dtype = compute_dtype

        keys = jax.random.split(key, len(self.out_dims))
        bound = 1.0 / float(self.in_dim) ** 0.5       # PyTorch Linear init bound
        self.w_ts, self.bs = [], []                   # unpadded f32 reference copies
        self.w_c, self.b_c = [], []                   # kernel operands (unpadded)
        for kk, d in zip(keys, self.out_dims):
            kw, kb = jax.random.split(kk)
            # torch stores weight as (out, in); keep the transposed (in, out) copy
            w_t = jax.random.uniform(kw, (self.in_dim, d), param_dtype, -bound, bound)
            b = jax.random.uniform(kb, (d,), param_dtype, -bound, bound)
            self.w_ts.append(w_t)
            self.bs.append(b)
            self.w_c.append(w_t.astype(compute_dtype))
            self.b_c.append(b.reshape(1, d).astype(jnp.float32))

    def __call__(self, x, *, add_skip_connection=0):
        lead = x.shape[:-1]
        k = x.shape[-1]
        assert k == self.in_dim, (k, self.in_dim)
        x2d = x.reshape(-1, k)
        # Fuse the skip add only when every segment's width matches the input
        # width (the only case a residual add is shape-valid at all).
        # TODO(synk): verify PyTorch SkipMLP behavior when out_dim != in_dim with
        #             add_skip_connection=1 (here the skip is silently dropped).
        fuse_skip = bool(add_skip_connection) and all(
            d == self.in_dim for d in self.out_dims)
        outs = fused_linear_2d(x2d, self.w_c, self.b_c,
                               out_dtype=x.dtype,
                               compute_dtype=self.compute_dtype,
                               add_skip=fuse_skip)
        return [o.reshape(*lead, d) for o, d in zip(outs, self.out_dims)]


# ----------------------------------------------------------------------------
# qkv_projector equivalent
# ----------------------------------------------------------------------------
class QKVProjector:
    def __init__(self, input_dim=50, output_dim=50, mlp_hidden_dims="",
                 projection_type="single_self", add_skip_connection=0,
                 dtype=jnp.float32, compute_dtype=jnp.float32, key=None):
        # TODO(synk): SkipMLP with non-empty mlp_hidden_dims (hidden-layer MLP)
        #             is not defined in the provided source; only the '' (pure
        #             linear mapping) case is implemented.
        assert mlp_hidden_dims == "", "only the linear-mapping SkipMLP is implemented"
        if key is None:
            key = jax.random.PRNGKey(0)
        self.projection_type = projection_type
        self.add_skip_connection = add_skip_connection
        if projection_type == "single_self":
            self.proj = FusedLinear(key, input_dim, (output_dim,),
                                    param_dtype=dtype, compute_dtype=compute_dtype)
        elif projection_type == "single_qkv":
            # three independent Linear layers fused into a single pallas_call
            self.proj = FusedLinear(key, input_dim, (output_dim,) * 3,
                                    param_dtype=dtype, compute_dtype=compute_dtype)
        elif projection_type == "joint_qkv":
            self.proj = FusedLinear(key, input_dim, (3 * output_dim,),
                                    param_dtype=dtype, compute_dtype=compute_dtype)
        else:
            raise Exception("Hmm this should not happen, unknown projection type ... ",
                            projection_type)

    def __call__(self, x, split_qkv=True):
        skip = self.add_skip_connection
        if self.projection_type == "single_self":
            return self.proj(x, add_skip_connection=skip)[0]
        elif self.projection_type == "single_qkv":
            q, k, v = self.proj(x, add_skip_connection=skip)
            return (q, k, v)
        else:  # joint_qkv
            joint = self.proj(x, add_skip_connection=skip)[0]
            if split_qkv:
                # Matches the PyTorch module exactly: slices by x.size(-1)
                # (the original code implicitly assumes input_dim == output_dim).
                embed_dim = x.shape[-1]
                q = joint[..., :embed_dim]
                k = joint[..., embed_dim:2 * embed_dim]
                v = joint[..., 2 * embed_dim:3 * embed_dim]
                return (q, k, v)
            return joint


# ----------------------------------------------------------------------------
# Demo / smoke test
# ----------------------------------------------------------------------------
if __name__ == "__main__":
    key = jax.random.PRNGKey(0)
    k_x, k_p1, k_p2, k_p3, k_p4 = jax.random.split(key, 5)

    batch, seq, dim = 2, 8, 32
    x = jax.random.normal(k_x, (batch, seq, dim), jnp.float32)
    x2d = x.reshape(-1, dim)

    # single_self
    proj_self = QKVProjector(input_dim=dim, output_dim=dim,
                             projection_type="single_self", key=k_p1)
    y_self = proj_self(x)
    jax.block_until_ready(y_self)
    ref_self = (x2d @ proj_self.proj.w_ts[0] + proj_self.proj.bs[0]).reshape(batch, seq, dim)
    assert jnp.allclose(y_self, ref_self, atol=1e-5)

    # single_self with fused skip connection (same weights as above)
    proj_skip = QKVProjector(input_dim=dim, output_dim=dim,
                             projection_type="single_self",
                             add_skip_connection=1, key=k_p1)
    y_skip = proj_skip(x)
    jax.block_until_ready(y_skip)
    assert jnp.allclose(y_skip, ref_self + x, atol=1e-5)

    # single_qkv: three projections fused into ONE pallas_call, 3 separate outputs
    proj_sep = QKVProjector(input_dim=dim, output_dim=dim,
                            projection_type="single_qkv", key=k_p2)
    q, k, v = proj_sep(x)
    jax.block_until_ready((q, k, v))
    for out, w_t, b in zip((q, k, v), proj_sep.proj.w_ts, proj_sep.proj.bs):
        ref_i = (x2d @ w_t + b).reshape(batch, seq, dim)
        assert jnp.allclose(out, ref_i, atol=1e-5)

    # single_qkv with fused skip connection (per-segment skip add)
    proj_sep_skip = QKVProjector(input_dim=dim, output_dim=dim,
                                 projection_type="single_qkv",
                                 add_skip_connection=1, key=k_p2)
    qs, ks, vs = proj_sep_skip(x)
    jax.block_until_ready((qs, ks, vs))
    for out, w_t, b in zip((qs, ks, vs), proj_sep_skip.proj.w_ts, proj_sep_skip.proj.bs):
        ref_i = (x2d @ w_t + b).reshape(batch, seq, dim) + x
        assert jnp.allclose(out, ref_i, atol=1e-5)

    # joint_qkv: one projection into 3*output_dim, split like the PyTorch module
    proj_joint = QKVProjector(input_dim=dim, output_dim=dim,
                              projection_type="joint_qkv", key=k_p3)
    qj, kj, vj = proj_joint(x, split_qkv=True)
    jax.block_until_ready((qj, kj, vj))
    ref_joint = (x2d @ proj_joint.proj.w_ts[0] + proj_joint.proj.bs[0]).reshape(batch, seq, 3 * dim)
    assert jnp.allclose(jnp.concatenate([qj, kj, vj], axis=-1), ref_joint, atol=1e-5)
    joint_full = proj_joint(x, split_qkv=False)
    jax.block_until_ready(joint_full)
    assert jnp.allclose(joint_full, ref_joint, atol=1e-5)

    # bf16 compute path (recommended on v6e / v7x) — looser tolerance vs f32 ref.
    # x stays f32 in HBM and is cast to bf16 inside the kernel.
    proj_bf16 = QKVProjector(input_dim=dim, output_dim=dim,
                             projection_type="single_qkv",
                             compute_dtype=jnp.bfloat16, key=k_p4)
    qb, kb_, vb = proj_bf16(x)
    jax.block_until_ready((qb, kb_, vb))
    ref_qb = (x2d @ proj_bf16.proj.w_ts[0] + proj_bf16.proj.bs[0]).reshape(batch, seq, dim)
    assert jnp.allclose(qb, ref_qb, atol=3e-2, rtol=3e-2)

    # ragged-M path (M not a multiple of the row tile) exercises the partial block
    x_odd = jax.random.normal(k_x, (3, 7, dim), jnp.float32)
    y_odd = proj_self(x_odd)
    jax.block_until_ready(y_odd)
    ref_odd = (x_odd.reshape(-1, dim) @ proj_self.proj.w_ts[0]
               + proj_self.proj.bs[0]).reshape(3, 7, dim)
    assert jnp.allclose(y_odd, ref_odd, atol=1e-5)

    assert y_self.shape == (batch, seq, dim)
    assert q.shape == k.shape == v.shape == (batch, seq, dim)
    assert qj.shape == kj.shape == vj.shape == (batch, seq, dim)

    print("KERNEL_OK")
</pallas_src>

<mosaic_0001>
module attributes {stable_mosaic.version = 11 : i64} {
  func.func @_linear_kernel(%arg0: i32, %arg1: memref<8x32xf32, #tpu.memory_space<vmem>>, %arg2: memref<32x32xf32, #tpu.memory_space<vmem>>, %arg3: memref<1x32xf32, #tpu.memory_space<vmem>>, %arg4: memref<8x32xf32, #tpu.memory_space<vmem>>) attributes {dimension_semantics = [#tpu.dimension_semantics<parallel>], iteration_bounds = array<i64: 2>, scalar_prefetch = 0 : i64, scratch_operands = 0 : i64, tpu.core_type = #tpu.core_type<tc>, window_params = [{transform_indices = @transform_0, window_bounds = array<i64: 8, 32>}, {pipeline_mode = #tpu.pipeline_mode<synchronous>, transform_indices = @transform_1, window_bounds = array<i64: 32, 32>}, {pipeline_mode = #tpu.pipeline_mode<synchronous>, transform_indices = @transform_2, window_bounds = array<i64: 1, 32>}, {transform_indices = @transform_3, window_bounds = array<i64: 8, 32>}]} {
    %c0 = arith.constant 0 : index
    %c0_0 = arith.constant 0 : index
    %0 = vector.load %arg1[%c0, %c0_0] : memref<8x32xf32, #tpu.memory_space<vmem>>, vector<8x32xf32>
    %c0_1 = arith.constant 0 : index
    %c0_2 = arith.constant 0 : index
    %1 = vector.load %arg2[%c0_1, %c0_2] : memref<32x32xf32, #tpu.memory_space<vmem>>, vector<32x32xf32>
    %cst = arith.constant dense<0.000000e+00> : vector<8x32xf32>
    %2 = tpu.matmul %0, %1, %cst {dimension_numbers = #tpu.dot_dimension_numbers<[1], [0], [0], [1], [0, 0, 1, 1], [], []>} : vector<8x32xf32>, vector<32x32xf32>, vector<8x32xf32> -> vector<8x32xf32>
    %c0_3 = arith.constant 0 : index
    %c0_4 = arith.constant 0 : index
    %3 = vector.load %arg3[%c0_3, %c0_4] : memref<1x32xf32, #tpu.memory_space<vmem>>, vector<1x32xf32>
    %4 = vector.broadcast %3 : vector<1x32xf32> to vector<8x32xf32>
    %5 = arith.addf %2, %4 : vector<8x32xf32>
    %c0_5 = arith.constant 0 : index
    %c0_6 = arith.constant 0 : index
    %6 = vector.load %arg4[%c0_5, %c0_6] : memref<8x32xf32, #tpu.memory_space<vmem>>, vector<8x32xf32>
    tpu.vector_store %arg4[%c0_5, %c0_6], %5 {strides = array<i32>} : memref<8x32xf32, #tpu.memory_space<vmem>>, vector<8x32xf32>,
    return
  }
  func.func @transform_0(%arg0: i32) -> (i32, i32) {
    %c0_i32 = arith.constant 0 : i32
    %c0_i32_0 = arith.constant 0 : i32
    return %arg0, %c0_i32 : i32, i32
  }
  func.func @transform_1(%arg0: i32) -> (i32, i32) {
    %c0_i32 = arith.constant 0 : i32
    %c0_i32_0 = arith.constant 0 : i32
    %c0_i32_1 = arith.constant 0 : i32
    return %c0_i32, %c0_i32_0 : i32, i32
  }
  func.func @transform_2(%arg0: i32) -> (i32, i32) {
    %c0_i32 = arith.constant 0 : i32
    %c0_i32_0 = arith.constant 0 : i32
    %c0_i32_1 = arith.constant 0 : i32
    return %c0_i32, %c0_i32_0 : i32, i32
  }
  func.func @transform_3(%arg0: i32) -> (i32, i32) {
    %c0_i32 = arith.constant 0 : i32
    %c0_i32_0 = arith.constant 0 : i32
    return %arg0, %c0_i32 : i32, i32
  }
}

</mosaic_0001>

<bundles_post_ra>
// kernel: tpu_custom_call.1
= control target key start
LH: loop header
LB: loop body
LE: loop exit
PB: predicated region body
PF: predicated region fallthrough
CT: control target
= control target key end

     0   :  { %8 = vsyncpa [#allocation3], 0  ;;  %s704_s0 = inlined_call_operand.hbm [shape: f32[16,32], index: 0, kind: input, shape index: {}]   ;;  %s705_s1 = inlined_call_operand.hbm [shape: f32[32,32], index: 1, kind: input, shape index: {}]   ;;  %s706_s2 = inlined_call_operand.vmem [shape: f32[1,32], index: 2, kind: input, shape index: {}]   ;;  %s707_s3 = inlined_call_operand.hbm [shape: f32[16,32], index: 3, kind: output, shape index: {}]  }
   0x1   :  { %10 = vsyncpa [#allocation3 + $0x1], 0 }
   0x2   :  { %11 = vsyncpa [#allocation6], 0 }
   0x3   :  { %12 = vsyncpa [#allocation4], 0 }
   0x4   :  { %14 = vsyncpa [#allocation4 + $0x1], 0  ;;  %s565_s12 = smov 0   ;;  %s567_s13 = smov 0  }
   0x5   :  { %s569_s14 = smov 0   ;;  %s571_s15 = smov 0  }
   0x6 LB: > { %s130_s18 = sshll.u32 %s705_s1, 4  ;;  %s589_s19 = sadd.s32 4294967295, %s540_s15   ;;  %s540_s15 = sphi %s571_s15, %s717_s15   ;;  %s536_s14 = sphi %s569_s14, %s716_s14   ;;  %s532_s13 = sphi %s567_s13, %s715_s13   ;;  %s528_s12 = sphi %s565_s12, %s714_s12   ;;  %s131_s18 = int_to_ptr.hbm [resolvable:$true] %s130_s18 }
   0x7   : > { %p336_p0 = scmp.ge.s32.totalorder %s540_s15, 1  ;;  %p41_p1 = scmp.eq.s32.totalorder %s589_s19, 0 }
   0x8   : > { %p119_p2 = scmp.lt.s32.totalorder %s540_s15, 3  ;;  %s542_s21 = smov [#allocation5]  }
   0x9   : > { %s132_s22 = sshll.u32 %s542_s21, 4  ;;  %s543_s23 = smov 128   ;;  %s133_s22 = int_to_ptr.vmem [resolvable:$true] %s132_s22 }
   0xa   : > { %p594_p3 = pnand %p336_p0, %p119_p2  ;;  %s544_s24 = smov 8  }
   0xb   : > { %s335_s25 = sadd.s32 4294967294, %s540_s15   ;;  %s605_s26 = sadd.s32 1, %s540_s15  }
   0xc   : > { %p358_p4 = pneg %p594_p3  ;;  %s27_s27 = sadd.s32 1, %s536_s14 }
   0xd   : > { %s24_s28 = ssub.s32 %s540_s15, %s605_s26  ;;  %p34_p7 = scmp.ne.s32.totalorder %s536_s14, %s532_s13 }
   0xe   : > { %p359_p6 = pnand %p358_p4, %p41_p1  ;;  %p25_p8 = scmp.eq.s32.totalorder %s24_s28, 0 }
   0xf   : > { %p35_p9 = scmp.eq.s32.totalorder %s540_s15, 0  ;;  %p40_p10 = scmp.ne.s32.totalorder %s532_s13, %s528_s12 }
  0x10   : > { %361 = dma.hbm_to_vmem [thread:$0]  (!%p359_p6), %s131_s18, 512, %s133_s22, [#allocation6], %s543_s23, %s543_s23, %s544_s24  }
  0x11   : > { %p106_p11 = scmp.eq.s32.totalorder %s589_s19, 1  ;;  %p621_p12 = por %p41_p1, %p40_p10 }
  0x12   : > { %s617_s29 = scalar_select %p25_p8, %s536_s14, %s27_s27  }
  0x13   : > { %p625_p13 = por %p106_p11, %p34_p7  ;;  %p112_p0 = scmp.eq.s32.totalorder %s335_s25, 1 }
  0x14   : > { %p36_p2 = por %p35_p9, %p34_p7  ;;  %s149_s5 = sand.u32 1, %s536_s14  }
  0x15   : > { %p630_p4 = por %p112_p0, %p40_p10  ;;  %p371_p6 = scmp.lt.s32.totalorder %s540_s15, 2 }
  0x16   : > { %s339_s7 = sshll.u32 %s149_s5, 3  ;;  %s340_s8 = sshll.u32 %s540_s15, 3 }
  0x17   : > { %s157_s11 = scalar_lea.hbm %s704_s0, %s340_s8  ;;  %s153_s17 = scalar_lea.vmem [#allocation2], %s339_s7 }
  0x18   : > { %s159_s16 = sshll.u32 %s157_s11, 4  ;;  %s161_s18 = sshll.u32 %s153_s17, 4  ;;  %s160_s16 = int_to_ptr.hbm [resolvable:$true] %s159_s16  ;;  %s162_s18 = int_to_ptr.vmem [resolvable:$true] %s161_s18 }
  0x19   : > { %p639_p8 = pnand %p371_p6, %p36_p2  ;;  %s150_s22 = scalar_lea.sflag [#allocation3], %s149_s5 }
  0x1a   : > { %s440_s23 = sshra.s32 %s160_s16, 4  ;;  %s447_s28 = scalar_lea.hbm %s704_s0, 16  ;;  %s441_s23 = int_to_ptr.hbm [resolvable:$true] %s440_s23 }
  0x1b   : > { %s442_s24 = scalar_lea.hbm %s441_s23, 8  ;;  %p444_p9 = pneg %p639_p8 }
  0x1c   : > { %p443_p7 = scmp.ne.s32.totalorder %s441_s23, %s442_s24  ;;  %p448_p0 = scmp.lt.s32.totalorder %s441_s23, %s704_s0 }
  0x1d   : > { %p449_p2 = scmp.lt.s32.totalorder %s447_s28, %s442_s24 }
  0x1e   : > { %p445_p10 = pnand %p444_p9, %p443_p7 }
  0x1f   : > { %p450_p6 = por %p449_p2, %p448_p0 }
  0x20   : > { %p446_p11 = pneg %p445_p10 }
  0x22   : > { %p451_p5 = pnand %p450_p6, %p446_p11 }
  0x24   : > { %454 = shalt.err (!%p451_p5)
}
  0x25   : > { %365 = dma.hbm_to_vmem [thread:$0]  (!%p639_p8), %s160_s16, 128, %s162_s18, %s150_s22  }
  0x26   : > { %170 = sbr.rel (%p594_p3) target bundleno = 185 (0xb9), region = 32  ;;  %s656_s5 = sand.u32 (!%p594_p3), 1, %s532_s13  }
  0x27   : > { %s342_s9 = sshll.u32 (!%p594_p3), %s656_s5, 3  ;;  %s173_s10 = scalar_lea.sflag (!%p594_p3), [#allocation3], %s656_s5 }
  0x28   : > { %s176_s11 = scalar_lea.vmem (!%p594_p3), [#allocation2], %s342_s9 }
  0x2b   : > { %515 = dma.done.wait (%p621_p12), %s173_s10, 128  }
  0x2c   : > { %517 = vsyncadd (%p621_p12), %s173_s10, 4294967168 }
  0x2d   : > { %519 = dma.done.wait (%p41_p1), [#allocation6], 512  }
  0x2e   : > { %521 = vsyncadd (%p41_p1), [#allocation6], 4294966784  ;;  %v209_v0 = vld [vmem:[#allocation5 + $0x18] sm:$0xff]  ;;  %v208_v1 = vld [vmem:[#allocation5 + $0x10] sm:$0xff]  ;;  %vm214_vm0 = vcmask 261120   ;;  %s347_s20 = sshll.u32 %s589_s19, 3 }
  0x2f   : > { %230 = vmatpush.msra.mxu0 %v209_v0  ;;  %v207_v2 = vld [vmem:[#allocation5 + $0x8] sm:$0xff]  ;;  %v206_v3 = vld [vmem:[#allocation5] sm:$0xff]  ;;  %v205_v4 = vld [vmem:[%s176_s11] sm:$0xff]  ;;  %s250_s17 = scalar_lea.hbm %s707_s3, %s347_s20  ;;  %s204_s22 = scalar_lea.vmem [#allocation7], %s342_s9 }
  0x30   : > { %v409_v5 = vld [vmem:[%s706_s2] ss:$0 sm:$0xff]  ;;  %s252_s23 = sshll.u32 %s204_s22, 4  ;;  %s254_s24 = sshll.u32 %s250_s17, 4  ;;  %s253_s23 = int_to_ptr.vmem [resolvable:$true] %s252_s23  ;;  %s255_s24 = int_to_ptr.hbm [resolvable:$true] %s254_s24 }
  0x31   : > { %231 = vmatpush.msra.mxu0 %v208_v1  ;;  %s240_s25 = scalar_lea.sflag [#allocation4], %s656_s5  ;;  %s484_s27 = sshra.s32 %s255_s24, 4  ;;  %s485_s27 = int_to_ptr.hbm [resolvable:$true] %s484_s27 }
  0x32   : > { %s486_s19 = scalar_lea.hbm %s485_s27, 8  ;;  %s490_s8 = scalar_lea.hbm %s707_s3, 16 }
  0x33   : > { %232 = vmatpush.msra.mxu0 %v207_v2  ;;  %p487_p1 = scmp.ne.s32.totalorder %s485_s27, %s486_s19  ;;  %p491_p12 = scmp.lt.s32.totalorder %s485_s27, %s707_s3 }
  0x34   : > { %p492_p8 = scmp.lt.s32.totalorder %s490_s8, %s486_s19 }
  0x35   : > { %233 = vmatpush.msra.mxu0 %v206_v3  ;;  %p488_p3 = pnand %p487_p1, %p625_p13 }
  0x36   : > { %345 = vmatmul.msk.f32.vlgmr.msra.gmra.mxu0 %vm214_vm0, %v205_v4  ;;  %p493_p7 = por %p492_p8, %p491_p12 }
  0x37   : > { %p489_p5 = pneg %p488_p3 }
  0x39   : > { %p494_p9 = pnand %p493_p7, %p489_p5 }
  0xb3   : > { %v235_v6 = vpop.f32.mrf.mxu0 }
  0xb4   : > { %v236_v7 = vadd.f32 %v409_v5, %v235_v6 }
  0xb6   : > { %238 = vst.msk [vmem:[%s204_s22] sm:$0xff] %vm214_vm0, %v236_v7 }
  0xb7   : > { %497 = shalt.err (!%p494_p9)
}
  0xb8   : > { %356 = dma.vmem_to_hbm [thread:$0]  (%p625_p13), %s253_s23, 128, %s255_s24, %s240_s25  }
  0xb9 PF: > { %s266_s5 = sand.u32 1, %s528_s12   ;;  %p713_p10 = scmp.ge.s32.totalorder %s540_s15, 2 }
  0xba   : > { %s267_s11 = scalar_lea.sflag [#allocation4], %s266_s5 }
  0xbb   : > { %p367_p11 = pnand %p713_p10, %p630_p4 }
  0xbd   : > { %p368_p0 = pneg %p367_p11 }
  0xbf   : > { %523 = dma.done.wait (%p368_p0), %s267_s11, 128  }
  0xc0   : > { %525 = vsyncadd (%p368_p0), %s267_s11, 4294967168  ;;  %p17_p2 = scmp.ge.s32.totalorder %s605_s26, 4   ;;  %s714_s12 = smov %s532_s13 }
  0xc1   : > { %s715_s13 = smov %s536_s14  ;;  %s716_s14 = smov %s617_s29 }
  0xc2   : > { %s717_s15 = smov %s605_s26  ;;  %19 = sbr.rel (!%p17_p2) target bundleno = 6 (0x6), region = 81 }
  0xc7   :  { %273 = vsyncpa [#allocation3], 1 }
  0xc8   :  { %275 = vsyncpa [#allocation3 + $0x1], 1 }
  0xc9   :  { %276 = vsyncpa [#allocation6], 1 }
  0xca   :  { %277 = vsyncpa [#allocation4], 1 }
  0xcb   :  { %279 = vsyncpa [#allocation4 + $0x1], 1 }

</bundles_post_ra>
